<compile_context>
chip_gen: v7x
topology: tpu7x:2x2x1
jax: 0.10.0
libtpu: 0.0.40
codegen_flags: <defaults>
</compile_context>

<pallas_src>
import math
import functools

import jax
import jax.numpy as jnp
from jax.experimental import pallas as pl
from jax.experimental.pallas import tpu as pltpu


# ---------------------------------------------------------------------------
# Buffer setup (matches PositionalEncoding.__init__)
# ---------------------------------------------------------------------------
def make_positional_encoding(max_len: int, d_model: int) -> jnp.ndarray:
    """pe[pos, 2i] = sin(pos * exp(-2i*ln(10000)/d)), pe[pos, 2i+1] = cos(...)."""
    position = jnp.arange(0, max_len, dtype=jnp.float32)[:, None]            # (L, 1)
    div_term = jnp.exp(
        jnp.arange(0, d_model, 2, dtype=jnp.float32)
        * -(math.log(10000.0) / d_model)
    )                                                                         # (D/2,)
    pe = jnp.zeros((max_len, d_model), dtype=jnp.float32)
    pe = pe.at[:, 0::2].set(jnp.sin(position * div_term))
    pe = pe.at[:, 1::2].set(jnp.cos(position * div_term))
    return pe                                                                 # (L, D)


# ---------------------------------------------------------------------------
# Kernels (operate on lane-dense (B, tile_cols) blocks of the flattened input)
# ---------------------------------------------------------------------------
def _pe_add_dropout_kernel(x_ref, pe_ref, bits_ref, o_ref, *, p: float):
    # x_ref: (B, T); pe_ref: (1, T) broadcast over batch; bits_ref: (B, T) uint32.
    y = x_ref[...] + pe_ref[...]
    # Inverted dropout via integer threshold: P(bits >= thr) = 1 - p.
    thr = jnp.uint32(min(int(round(p * 2.0 ** 32)), 2 ** 32 - 1))
    keep = bits_ref[...] >= thr
    scale = 1.0 / (1.0 - p)
    o_ref[...] = jnp.where(keep, y * scale, 0.0).astype(o_ref.dtype)


def _pe_add_kernel(x_ref, pe_ref, o_ref):
    o_ref[...] = (x_ref[...] + pe_ref[...]).astype(o_ref.dtype)


# ---------------------------------------------------------------------------
# Tiling helper
# ---------------------------------------------------------------------------
def _pick_tile_cols(sd: int, batch: int) -> int:
    """Largest multiple-of-128 divisor of sd giving ~1 MiB f32 x-blocks."""
    if sd % 128 != 0:
        # Full-extent fallback still satisfies the (8,128) block rule.
        return sd
    target = max(128, ((1 << 20) // (4 * max(batch, 1))) // 128 * 128)
    cand = min(sd, target)
    while cand >= 128:
        if sd % cand == 0:
            return cand
        cand -= 128
    return sd


# ---------------------------------------------------------------------------
# Wrapper
# ---------------------------------------------------------------------------
def positional_encoding_forward(x, pe, *, p: float = 0.1, training: bool = True,
                                rng_key=None):
    """x: (B, S, D); pe: (max_len, D). Returns dropout(x + pe[:S]) with PE broadcast
    over batch.  Dropout uses inverted scaling 1/(1-p), matching nn.Dropout."""
    B, S, D = x.shape
    SD = S * D
    x2 = x.reshape(B, SD)                               # lane-dense flatten
    pe2 = pe[:S, :].reshape(1, SD)                      # broadcast row

    tile = _pick_tile_cols(SD, B)
    grid = (SD // tile,)

    x_spec = pl.BlockSpec((B, tile), lambda j: (0, j))
    pe_spec = pl.BlockSpec((1, tile), lambda j: (0, j))
    out_spec = pl.BlockSpec((B, tile), lambda j: (0, j))

    cparams = pltpu.CompilerParams(
        dimension_semantics=("parallel",),              # no carried state across tiles
    )

    if training and p > 0.0:
        if rng_key is None:
            rng_key = jax.random.PRNGKey(0)
        bits = jax.random.bits(rng_key, (B, SD), dtype=jnp.uint32)
        kernel = functools.partial(_pe_add_dropout_kernel, p=float(p))
        out2 = pl.pallas_call(
            kernel,
            out_shape=jax.ShapeDtypeStruct((B, SD), x.dtype),
            grid=grid,
            in_specs=[x_spec, pe_spec,
                      pl.BlockSpec((B, tile), lambda j: (0, j))],
            out_specs=out_spec,
            compiler_params=cparams,
        )(x2, pe2, bits)
    else:
        out2 = pl.pallas_call(
            _pe_add_kernel,
            out_shape=jax.ShapeDtypeStruct((B, SD), x.dtype),
            grid=grid,
            in_specs=[x_spec, pe_spec],
            out_specs=out_spec,
            compiler_params=cparams,
        )(x2, pe2)

    return out2.reshape(B, S, D)


# ---------------------------------------------------------------------------
# Demo
# ---------------------------------------------------------------------------
if __name__ == "__main__":
    d_model = 32
    max_len = 64
    dropout_p = 0.1
    B, S = 2, 8

    key = jax.random.PRNGKey(0)
    x_key, drop_key = jax.random.split(key)
    x = jax.random.normal(x_key, (B, S, d_model), dtype=jnp.float32)
    pe = make_positional_encoding(max_len, d_model)

    # Training path (add + inverted dropout), deterministic given drop_key.
    out_train = jax.block_until_ready(
        positional_encoding_forward(x, pe, p=dropout_p, training=True,
                                    rng_key=drop_key))
    assert out_train.shape == (B, S, d_model) and out_train.dtype == jnp.float32

    # Verify training path against a pure-JAX reference built from the same bits.
    bits_ref = jax.random.bits(drop_key, (B, S * d_model), dtype=jnp.uint32)
    thr = jnp.uint32(min(int(round(dropout_p * 2.0 ** 32)), 2 ** 32 - 1))
    scale = 1.0 / (1.0 - dropout_p)
    y_ref = (x + pe[:S][None, :, :]).reshape(B, S * d_model)
    ref_train = jnp.where(bits_ref >= thr, y_ref * scale, 0.0).reshape(B, S, d_model)
    assert jnp.allclose(out_train, ref_train, atol=1e-6), "training-path mismatch"

    # Eval path (dropout disabled) must equal x + pe[:S].
    out_eval = jax.block_until_ready(
        positional_encoding_forward(x, pe, p=dropout_p, training=False))
    ref_eval = x + pe[:S][None, :, :]
    assert jnp.allclose(out_eval, ref_eval, atol=1e-6), "eval-path mismatch"

    print("KERNEL_OK")
</pallas_src>

<mosaic_0001>
module attributes {stable_mosaic.version = 11 : i64} {
  func.func @_pe_add_dropout_kernel(%arg0: i32, %arg1: memref<2x256xf32, #tpu.memory_space<vmem>>, %arg2: memref<1x256xf32, #tpu.memory_space<vmem>>, %arg3: memref<2x256xi32, #tpu.memory_space<vmem>>, %arg4: memref<2x256xf32, #tpu.memory_space<vmem>>) attributes {dimension_semantics = [#tpu.dimension_semantics<parallel>], iteration_bounds = array<i64: 1>, scalar_prefetch = 0 : i64, scratch_operands = 0 : i64, tpu.core_type = #tpu.core_type<tc>, window_params = [{transform_indices = @transform_0, window_bounds = array<i64: 2, 256>}, {transform_indices = @transform_1, window_bounds = array<i64: 1, 256>}, {transform_indices = @transform_2, window_bounds = array<i64: 2, 256>}, {transform_indices = @transform_3, window_bounds = array<i64: 2, 256>}]} {
    %c0 = arith.constant 0 : index
    %c0_0 = arith.constant 0 : index
    %0 = vector.load %arg1[%c0, %c0_0] : memref<2x256xf32, #tpu.memory_space<vmem>>, vector<2x256xf32>
    %c0_1 = arith.constant 0 : index
    %c0_2 = arith.constant 0 : index
    %1 = vector.load %arg2[%c0_1, %c0_2] : memref<1x256xf32, #tpu.memory_space<vmem>>, vector<1x256xf32>
    %2 = vector.broadcast %1 : vector<1x256xf32> to vector<2x256xf32>
    %3 = arith.addf %0, %2 : vector<2x256xf32>
    %c0_3 = arith.constant 0 : index
    %c0_4 = arith.constant 0 : index
    %4 = vector.load %arg3[%c0_3, %c0_4] : memref<2x256xi32, #tpu.memory_space<vmem>>, vector<2x256xi32>
    %c429496730_i32 = arith.constant 429496730 : i32
    %5 = vector.broadcast %c429496730_i32 : i32 to vector<2x256xi32>
    %6 = arith.cmpi uge, %4, %5 : vector<2x256xi32>
    %cst = arith.constant 1.11111116 : f32
    %7 = vector.broadcast %cst : f32 to vector<2x256xf32>
    %8 = arith.mulf %3, %7 : vector<2x256xf32>
    %cst_5 = arith.constant 0.000000e+00 : f32
    %9 = vector.broadcast %cst_5 : f32 to vector<2x256xf32>
    %10 = arith.select %6, %8, %9 : vector<2x256xi1>, vector<2x256xf32>
    %c0_6 = arith.constant 0 : index
    %c0_7 = arith.constant 0 : index
    %11 = vector.load %arg4[%c0_6, %c0_7] : memref<2x256xf32, #tpu.memory_space<vmem>>, vector<2x256xf32>
    tpu.vector_store %arg4[%c0_6, %c0_7], %10 {strides = array<i32>} : memref<2x256xf32, #tpu.memory_space<vmem>>, vector<2x256xf32>,
    return
  }
  func.func @transform_0(%arg0: i32) -> (i32, i32) {
    %c0_i32 = arith.constant 0 : i32
    %c0_i32_0 = arith.constant 0 : i32
    return %c0_i32, %arg0 : i32, i32
  }
  func.func @transform_1(%arg0: i32) -> (i32, i32) {
    %c0_i32 = arith.constant 0 : i32
    %c0_i32_0 = arith.constant 0 : i32
    return %c0_i32, %arg0 : i32, i32
  }
  func.func @transform_2(%arg0: i32) -> (i32, i32) {
    %c0_i32 = arith.constant 0 : i32
    %c0_i32_0 = arith.constant 0 : i32
    return %c0_i32, %arg0 : i32, i32
  }
  func.func @transform_3(%arg0: i32) -> (i32, i32) {
    %c0_i32 = arith.constant 0 : i32
    %c0_i32_0 = arith.constant 0 : i32
    return %c0_i32, %arg0 : i32, i32
  }
}

</mosaic_0001>

<bundles_post_ra>
// kernel: tpu_custom_call.1
= control target key start
LH: loop header
LB: loop body
LE: loop exit
PB: predicated region body
PF: predicated region fallthrough
CT: control target
= control target key end

     0   :  { %8 = vsyncpa [#allocation3], 0  ;;  %s172_s0 = inlined_call_operand.hbm [shape: f32[2,256], index: 0, kind: input, shape index: {}]   ;;  %s173_s1 = inlined_call_operand.vmem [shape: f32[1,256], index: 1, kind: input, shape index: {}]   ;;  %s174_s2 = inlined_call_operand.vmem [shape: u32[2,256], index: 2, kind: input, shape index: {}]   ;;  %s175_s3 = inlined_call_operand.hbm [shape: f32[2,256], index: 3, kind: output, shape index: {}]  }
   0x1   :  { %9 = vsyncpa [#allocation4], 0  ;;  %s119_s12 = smov [#allocation2]   ;;  %s71_s16 = scalar_lea.hbm %s172_s0, 64 }
   0x2   :  { %s16_s13 = sshll.u32 %s119_s12, 4  ;;  %p72_p0 = scmp.ne.s32.totalorder %s172_s0, %s71_s16  ;;  %s17_s13 = int_to_ptr.vmem [resolvable:$true] %s16_s13 }
   0x3   :  { %p75_p1 = scmp.lt.u32.totalorder %s71_s16, %s172_s0 }
   0x5   :  { %p77_p2 = pnand %p75_p1, %p72_p0 }
   0x7   :  { %80 = shalt.err (!%p77_p2)
}
   0x8   :  { %s81_s21 = scalar_lea.vmem %s17_s13, 64  ;;  %p86_p4 = scmp.lt.s32.totalorder %s17_s13, %s17_s13 }
   0x9   :  { %p82_p3 = scmp.ne.s32.totalorder %s17_s13, %s81_s21  ;;  %p87_p5 = scmp.lt.s32.totalorder %s81_s21, %s81_s21 }
   0xb   :  { %p88_p6 = por %p87_p5, %p86_p4 }
   0xd   :  { %p89_p7 = pnand %p88_p6, %p82_p3 }
   0xf   :  { %92 = shalt.err (!%p89_p7)
}
  0x10   :  { %19 = dma.hbm_to_vmem [thread:$0]  %s172_s0, 64, %s17_s13, [#allocation3]  }
  0x11   :  { %115 = dma.done.wait [#allocation3], 64  }
  0x12   :  { %116 = vsyncadd [#allocation3], 4294967232  ;;  %v30_v0 = vlaneseq  ;;  %v120_v1 = vmov 1983009808   ;;  %v28_v7 = vld [vmem:[%s173_s1] sm:$0x3] }
  0x13   :  { %v40_v2 = vunpack.c.l.s4 %v120_v1  ;;  %v27_v12 = vld [vmem:[#allocation2] sm:$0xf]  ;;  %s121_s27 = smov [#allocation5]  }
  0x14   :  { %v31_v3 = vshrl.u32 %v30_v0, 7  ;;  %v48_v14 = vld [vmem:[%s174_s2] sm:$0xf]  ;;  %s59_s28 = sshll.u32 %s121_s27, 4  ;;  %s60_s28 = int_to_ptr.vmem [resolvable:$true] %s59_s28 }
  0x15   :  { %v41_v6 = vunpack.c.0.s8 %v40_v2  ;;  %vm49_vm0 = vcmp.ge.u32.totalorder %v48_v14, 429496730  ;;  %s93_s29 = scalar_lea.vmem %s60_s28, 64  ;;  %p98_p9 = scmp.lt.s32.totalorder %s60_s28, %s60_s28 }
  0x16   :  { %v32_v4 = vsub.s32 0, %v31_v3  ;;  %v36_v5 = vsub.s32 1, %v31_v3  ;;  %p94_p8 = scmp.ne.s32.totalorder %s60_s28, %s93_s29  ;;  %p99_p10 = scmp.lt.s32.totalorder %s93_s29, %s93_s29 }
  0x17   :  { %v44_v10 = vsub.s32 %v41_v6, %v31_v3 }
  0x18   :  { %v33_v8 = vrot.slane %v28_v7, %v32_v4  ;;  %v37_v9 = vrot.slane %v28_v7, %v36_v5  ;;  %p100_p11 = por %p99_p10, %p98_p9 }
  0x1a   :  { %v38_v11 = vcombine.low %v33_v8, %v37_v9  ;;  %p101_p12 = pnand %p100_p11, %p94_p8 }
  0x1c   :  { %v45_v13 = vrot.slane %v38_v11, %v44_v10 }
  0x1e   :  { %v47_v15 = vadd.f32 %v45_v13, %v27_v12 }
  0x20   :  { %v50_v16 = vmul.f32 1.1111112, %v47_v15 }
  0x22   :  { %v51_v17 = vsel %vm49_vm0, %v50_v16, 0.0 }
  0x23   :  { %52 = vst [vmem:[#allocation5] sm:$0xf] %v51_v17 }
  0x24   :  { %104 = shalt.err (!%p101_p12)
}
  0x25   :  { %s105_s4 = scalar_lea.hbm %s175_s3, 64 }
  0x26   :  { %p106_p13 = scmp.ne.s32.totalorder %s175_s3, %s105_s4  ;;  %p109_p0 = scmp.lt.u32.totalorder %s105_s4, %s175_s3 }
  0x28   :  { %p111_p1 = pnand %p109_p0, %p106_p13 }
  0x2a   :  { %114 = shalt.err (!%p111_p1)
}
  0x2b   :  { %62 = dma.vmem_to_hbm [thread:$0]  %s60_s28, 64, %s175_s3, [#allocation4]  }
  0x2c   :  { %117 = dma.done.wait [#allocation4], 64  }
  0x2d   :  { %118 = vsyncadd [#allocation4], 4294967232 }
  0x2e   :  { %66 = vsyncpa [#allocation3], 1 }
  0x2f   :  { %67 = vsyncpa [#allocation4], 1 }

</bundles_post_ra>
